<compile_context>
chip_gen: v7x
topology: tpu7x:2x2x1
jax: 0.10.0
libtpu: 0.0.40
codegen_flags: <defaults>
</compile_context>

<pallas_src>
import functools

import jax
import jax.numpy as jnp
from jax.experimental import pallas as pl
from jax.experimental.pallas import tpu as pltpu

EPS = 1e-12


def _mha_gln_kernel(x_ref, wqkv_ref, bqkv_ref, wo_ref, bo_ref,
                    gamma_ref, beta_ref, o_ref, ctx_ref,
                    *, num_heads, head_dim):
    """One grid step: a (Bblk, T, E) block of batch elements, fully in VMEM."""
    bblk, seq, emb = x_ref.shape
    n_rows = bblk * seq

    x3 = x_ref[...].astype(jnp.float32)                 # (Bblk, T, E) f32 residual/gLN path
    x2 = x3.reshape(n_rows, emb)                        # leading-dim merge only (no relayout)
    xb = x2.astype(jnp.bfloat16)                        # bf16 MXU operand

    # ---- fused Q/K/V projection: one lane-dense (n_rows,E)@(E,3E) matmul ----
    qkv = (jnp.dot(xb, wqkv_ref[...], preferred_element_type=jnp.float32)
           + bqkv_ref[...])                             # (n_rows, 3E) f32
    qkv = qkv.astype(jnp.bfloat16).reshape(bblk, seq, 3 * emb)

    # ---- per-head attention; contexts staged into (Bblk,T,E) bf16 scratch ----
    # TODO(synk): for large T / num_heads switch to lax.fori_loop + flash-style
    # KV tiling so live ranges stay bounded instead of static unrolling.
    for h in range(num_heads):
        lo = h * head_dim
        q = qkv[:, :, lo:lo + head_dim]                                  # (Bblk,T,hd)
        k = qkv[:, :, emb + lo:emb + lo + head_dim]
        v = qkv[:, :, 2 * emb + lo:2 * emb + lo + head_dim]

        s = jnp.einsum("bqd,bkd->bqk", q, k,
                       preferred_element_type=jnp.float32)               # (Bblk,T,T) f32
        s = s - jnp.max(s, axis=-1, keepdims=True)
        p = jnp.exp(s)
        p = p * pl.reciprocal(jnp.sum(p, axis=-1, keepdims=True), approx=True)
        ctx = jnp.einsum("bqk,bkd->bqd", p.astype(jnp.bfloat16), v,
                         preferred_element_type=jnp.float32)             # (Bblk,T,hd)
        ctx_ref[:, :, lo:lo + head_dim] = ctx.astype(jnp.bfloat16)

    # ---- fused out-projection (one (n_rows,E)@(E,E)) + residual ----
    attn = jnp.dot(ctx_ref[...].reshape(n_rows, emb), wo_ref[...],
                   preferred_element_type=jnp.float32)                   # (n_rows, E) f32
    y = x2 + attn + bo_ref[...]

    # ---- gLN per batch element over (T, E): single-pass stats ----
    y3 = y.reshape(bblk, seq, emb)
    inv_n = 1.0 / float(seq * emb)
    s1 = jnp.sum(jnp.sum(y3, axis=2, keepdims=True), axis=1, keepdims=True)
    s2 = jnp.sum(jnp.sum(y3 * y3, axis=2, keepdims=True), axis=1, keepdims=True)
    mean = s1 * inv_n
    var = jnp.maximum(s2 * inv_n - mean * mean, 0.0)      # clamp: f32 cancellation safety
    y_norm = (y3 - mean) * jax.lax.rsqrt(var + jnp.float32(EPS))
    gamma = gamma_ref[...].reshape(1, 1, emb)
    beta = beta_ref[...].reshape(1, 1, emb)
    o_ref[...] = (gamma * y_norm + beta).astype(o_ref.dtype)


def _vmem_capacity_bytes():
    """Per-core VMEM capacity; conservative (v7x) fallback if the query fails."""
    try:
        return int(pltpu.get_tpu_info().vmem_capacity_bytes)
    except Exception:
        return 64 * 1024 * 1024


def _per_batch_elem_vmem(seq, emb):
    """Rough upper bound on VMEM bytes per batch element per grid step:
    double-buffered in/out blocks + f32/bf16 intermediates + per-head scores."""
    return 48 * seq * emb + 8 * seq * seq


def _pick_block_b(batch, seq, emb):
    """Batch elements per grid step: aim for ~512-1024 rows, cap by VMEM budget.
    No forced multi-step split (the grid is a serial loop on 1-TC chips)."""
    per_b = _per_batch_elem_vmem(seq, emb)
    budget = int(0.55 * _vmem_capacity_bytes())
    vmem_max = max(1, budget // max(per_b, 1))
    rows_max = max(1, 1024 // max(seq, 1))
    limit = max(1, min(batch, vmem_max, rows_max))
    for d in range(limit, 0, -1):
        if batch % d == 0:
            return d
    return 1


def self_mha_gln_block(x_bte, params, num_heads, block_b=None):
    """x_bte: (B, T, E) float32. Returns gLN(x + MHA(x, x, x)) with shape (B, T, E)."""
    B, T, E = x_bte.shape
    assert E % num_heads == 0
    hd = E // num_heads
    if block_b is None:
        block_b = _pick_block_b(B, T, E)
    assert B % block_b == 0
    grid_b = B // block_b
    scale = 1.0 / (hd ** 0.5)

    # Fused, lane-dense weights (scale folded into the Q slice); bf16 weights
    # (halves DMA/VMEM, MXU runs at bf16 rate), f32 biases / gLN affine.
    wqkv = jnp.concatenate([params["wq"] * scale, params["wk"], params["wv"]],
                           axis=1).astype(jnp.bfloat16)                 # (E, 3E)
    bqkv = jnp.concatenate([params["bq"] * scale, params["bk"], params["bv"]],
                           axis=1).astype(jnp.float32)                  # (1, 3E)
    wo = params["wo"].astype(jnp.bfloat16)                              # (E, E)
    bo = params["bo"].astype(jnp.float32)                               # (1, E)
    gamma = params["gamma"].astype(jnp.float32)                         # (1, E)
    beta = params["beta"].astype(jnp.float32)                           # (1, E)

    # Generation-aware VMEM request: footprint estimate with margin, clamped
    # well below physical capacity (v7x: 64 MiB total; v5e/v6e: 128 MiB).
    cap = _vmem_capacity_bytes()
    est = (block_b * _per_batch_elem_vmem(T, E)
           + 4 * (E * 3 * E * 2 + E * E * 2)        # double-buffered bf16 weights + margin
           + 64 * E * 4)                            # biases / affine
    vmem_limit = int(min(0.85 * cap,
                         max(32 * 1024 * 1024, 2 * est, est + (8 << 20))))

    def whole(shape):                               # full-array (constant-index) block
        return pl.BlockSpec(shape, lambda i: (0,) * len(shape))

    kernel = functools.partial(_mha_gln_kernel, num_heads=num_heads, head_dim=hd)

    return pl.pallas_call(
        kernel,
        out_shape=jax.ShapeDtypeStruct((B, T, E), x_bte.dtype),
        grid_spec=pltpu.PrefetchScalarGridSpec(
            num_scalar_prefetch=0,
            grid=(grid_b,),
            in_specs=[
                pl.BlockSpec((block_b, T, E), lambda i: (i, 0, 0)),   # x
                whole((E, 3 * E)),                                    # fused W_qkv (Q scaled)
                whole((1, 3 * E)),                                    # fused b_qkv (Q scaled)
                whole((E, E)),                                        # W_o
                whole((1, E)),                                        # b_o
                whole((1, E)),                                        # gamma
                whole((1, E)),                                        # beta
            ],
            out_specs=pl.BlockSpec((block_b, T, E), lambda i: (i, 0, 0)),
            scratch_shapes=[pltpu.VMEM((block_b, T, E), jnp.bfloat16)],  # head-ctx staging
        ),
        compiler_params=pltpu.CompilerParams(
            dimension_semantics=("parallel",),
            vmem_limit_bytes=vmem_limit,
        ),
    )(x_bte, wqkv, bqkv, wo, bo, gamma, beta)


def make_params(key, embed_dim):
    """Deterministic synthetic params matching nn.MultiheadAttention + gLN shapes."""
    E = embed_dim
    ks = jax.random.split(key, 8)
    s = 1.0 / (E ** 0.5)
    wq = jax.random.uniform(ks[0], (E, E), jnp.float32, -s, s)
    wk = jax.random.uniform(ks[1], (E, E), jnp.float32, -s, s)
    wv = jax.random.uniform(ks[2], (E, E), jnp.float32, -s, s)
    wo = jax.random.uniform(ks[3], (E, E), jnp.float32, -s, s)
    bq = 0.02 * jax.random.normal(ks[4], (1, E), jnp.float32)
    bk = 0.02 * jax.random.normal(ks[5], (1, E), jnp.float32)
    bv = 0.02 * jax.random.normal(ks[6], (1, E), jnp.float32)
    bo = 0.02 * jax.random.normal(ks[7], (1, E), jnp.float32)
    gamma = jnp.ones((1, E), jnp.float32)
    beta = jnp.zeros((1, E), jnp.float32)
    return dict(wq=wq, wk=wk, wv=wv, wo=wo, bq=bq, bk=bk, bv=bv, bo=bo,
                gamma=gamma, beta=beta)


def ref_forward(x_bte, p, num_heads):
    """Pure-JAX f32 reference reproducing the PyTorch block forward."""
    def per_batch(x):
        T, E = x.shape
        hd = E // num_heads
        q = x @ p["wq"] + p["bq"][0]
        k = x @ p["wk"] + p["bk"][0]
        v = x @ p["wv"] + p["bv"][0]
        qh = q.reshape(T, num_heads, hd).transpose(1, 0, 2)
        kh = k.reshape(T, num_heads, hd).transpose(1, 0, 2)
        vh = v.reshape(T, num_heads, hd).transpose(1, 0, 2)
        s = jnp.einsum("htd,hsd->hts", qh, kh) / jnp.sqrt(jnp.float32(hd))
        a = jax.nn.softmax(s, axis=-1)
        o = jnp.einsum("hts,hsd->htd", a, vh).transpose(1, 0, 2).reshape(T, E)
        y = o @ p["wo"] + p["bo"][0] + x
        mean = jnp.mean(y)
        var = jnp.mean((y - mean) ** 2)
        return p["gamma"][0] * (y - mean) / jnp.sqrt(var + EPS) + p["beta"][0]
    return jax.vmap(per_batch)(x_bte)


if __name__ == "__main__":
    B, T, E, H = 2, 8, 32, 4   # batch rows, attended length, num_features, heads
    key = jax.random.PRNGKey(0)
    kx, kp = jax.random.split(key)
    x = jax.random.normal(kx, (B, T, E), jnp.float32)
    params = make_params(kp, E)

    out = self_mha_gln_block(x, params, num_heads=H)
    out = jax.block_until_ready(out)

    ref = ref_forward(x, params, H)
    assert out.shape == (B, T, E)
    max_err = float(jnp.max(jnp.abs(out - ref)))
    # Tolerance accounts for bf16 matmul operands + approx reciprocal (f32 accum).
    assert jnp.allclose(out, ref, rtol=2e-2, atol=2e-2), \
        f"mismatch vs reference, max|err|={max_err}"

    print("KERNEL_OK")
</pallas_src>

<mosaic_0001>
module attributes {stable_mosaic.version = 11 : i64} {
  func.func @_mha_gln_kernel(%arg0: i32, %arg1: memref<2x8x32xf32, #tpu.memory_space<vmem>>, %arg2: memref<32x96xbf16, #tpu.memory_space<vmem>>, %arg3: memref<1x96xf32, #tpu.memory_space<vmem>>, %arg4: memref<32x32xbf16, #tpu.memory_space<vmem>>, %arg5: memref<1x32xf32, #tpu.memory_space<vmem>>, %arg6: memref<1x32xf32, #tpu.memory_space<vmem>>, %arg7: memref<1x32xf32, #tpu.memory_space<vmem>>, %arg8: memref<2x8x32xf32, #tpu.memory_space<vmem>>, %arg9: memref<2x8x32xbf16, #tpu.memory_space<vmem>>) attributes {dimension_semantics = [#tpu.dimension_semantics<parallel>], iteration_bounds = array<i64: 1>, scalar_prefetch = 0 : i64, scratch_operands = 1 : i64, tpu.core_type = #tpu.core_type<tc>, window_params = [{transform_indices = @transform_0, window_bounds = array<i64: 2, 8, 32>}, {pipeline_mode = #tpu.pipeline_mode<synchronous>, transform_indices = @transform_1, window_bounds = array<i64: 32, 96>}, {pipeline_mode = #tpu.pipeline_mode<synchronous>, transform_indices = @transform_2, window_bounds = array<i64: 1, 96>}, {pipeline_mode = #tpu.pipeline_mode<synchronous>, transform_indices = @transform_3, window_bounds = array<i64: 32, 32>}, {pipeline_mode = #tpu.pipeline_mode<synchronous>, transform_indices = @transform_4, window_bounds = array<i64: 1, 32>}, {pipeline_mode = #tpu.pipeline_mode<synchronous>, transform_indices = @transform_5, window_bounds = array<i64: 1, 32>}, {pipeline_mode = #tpu.pipeline_mode<synchronous>, transform_indices = @transform_6, window_bounds = array<i64: 1, 32>}, {transform_indices = @transform_7, window_bounds = array<i64: 2, 8, 32>}]} {
    %c0 = arith.constant 0 : index
    %c0_0 = arith.constant 0 : index
    %c0_1 = arith.constant 0 : index
    %0 = vector.load %arg1[%c0, %c0_0, %c0_1] : memref<2x8x32xf32, #tpu.memory_space<vmem>>, vector<2x8x32xf32>
    %1 = vector.shape_cast %0 : vector<2x8x32xf32> to vector<16x32xf32>
    %2 = arith.truncf %1 : vector<16x32xf32> to vector<16x32xbf16>
    %c0_2 = arith.constant 0 : index
    %c0_3 = arith.constant 0 : index
    %3 = vector.load %arg2[%c0_2, %c0_3] : memref<32x96xbf16, #tpu.memory_space<vmem>>, vector<32x96xbf16>
    %cst = arith.constant dense<0.000000e+00> : vector<16x96xf32>
    %4 = tpu.matmul %2, %3, %cst {dimension_numbers = #tpu.dot_dimension_numbers<[1], [0], [0], [1], [0, 0, 1, 1], [], []>} : vector<16x32xbf16>, vector<32x96xbf16>, vector<16x96xf32> -> vector<16x96xf32>
    %c0_4 = arith.constant 0 : index
    %c0_5 = arith.constant 0 : index
    %5 = vector.load %arg3[%c0_4, %c0_5] : memref<1x96xf32, #tpu.memory_space<vmem>>, vector<1x96xf32>
    %6 = vector.broadcast %5 : vector<1x96xf32> to vector<16x96xf32>
    %7 = arith.addf %4, %6 : vector<16x96xf32>
    %8 = arith.truncf %7 : vector<16x96xf32> to vector<16x96xbf16>
    %9 = vector.shape_cast %8 : vector<16x96xbf16> to vector<2x8x96xbf16>
    %10 = vector.extract_strided_slice %9 {offsets = [0, 0, 0], sizes = [2, 8, 8], strides = [1, 1, 1]} : vector<2x8x96xbf16> to vector<2x8x8xbf16>
    %11 = vector.extract_strided_slice %9 {offsets = [0, 0, 32], sizes = [2, 8, 8], strides = [1, 1, 1]} : vector<2x8x96xbf16> to vector<2x8x8xbf16>
    %12 = vector.extract_strided_slice %9 {offsets = [0, 0, 64], sizes = [2, 8, 8], strides = [1, 1, 1]} : vector<2x8x96xbf16> to vector<2x8x8xbf16>
    "tpu.trace_start"() <{level = 10 : i32, message = "bqd,bkd->bqk"}> : () -> ()
    %cst_6 = arith.constant dense<0.000000e+00> : vector<2x8x8xf32>
    %13 = tpu.matmul %10, %11, %cst_6 {dimension_numbers = #tpu.dot_dimension_numbers<[2], [2], [1], [1], [0, 0, 0, 1, 1, 1], [0], [0]>} : vector<2x8x8xbf16>, vector<2x8x8xbf16>, vector<2x8x8xf32> -> vector<2x8x8xf32>
    "tpu.trace_stop"() : () -> ()
    %cst_7 = arith.constant dense<0xFF800000> : vector<2x8xf32>
    %14 = vector.multi_reduction <maximumf>, %13, %cst_7 [2] : vector<2x8x8xf32> to vector<2x8xf32>
    %15 = vector.shape_cast %14 : vector<2x8xf32> to vector<2x8x1xf32>
    %16 = vector.broadcast %15 : vector<2x8x1xf32> to vector<2x8x8xf32>
    %17 = arith.subf %13, %16 : vector<2x8x8xf32>
    %18 = math.exp %17 : vector<2x8x8xf32>
    %cst_8 = arith.constant dense<0.000000e+00> : vector<2x8xf32>
    %19 = vector.multi_reduction <add>, %18, %cst_8 [2] : vector<2x8x8xf32> to vector<2x8xf32>
    %20 = vector.shape_cast %19 : vector<2x8xf32> to vector<2x8x1xf32>
    %21 = tpu.reciprocal %20 {approx = true} : vector<2x8x1xf32> -> vector<2x8x1xf32>
    %22 = vector.broadcast %21 : vector<2x8x1xf32> to vector<2x8x8xf32>
    %23 = arith.mulf %18, %22 : vector<2x8x8xf32>
    %24 = arith.truncf %23 : vector<2x8x8xf32> to vector<2x8x8xbf16>
    "tpu.trace_start"() <{level = 10 : i32, message = "bqk,bkd->bqd"}> : () -> ()
    %cst_9 = arith.constant dense<0.000000e+00> : vector<2x8x8xf32>
    %25 = tpu.matmul %24, %12, %cst_9 {dimension_numbers = #tpu.dot_dimension_numbers<[2], [1], [1], [2], [0, 0, 0, 1, 1, 2], [0], [0]>} : vector<2x8x8xbf16>, vector<2x8x8xbf16>, vector<2x8x8xf32> -> vector<2x8x8xf32>
    "tpu.trace_stop"() : () -> ()
    %26 = arith.truncf %25 : vector<2x8x8xf32> to vector<2x8x8xbf16>
    %c0_10 = arith.constant 0 : index
    %c0_11 = arith.constant 0 : index
    %c0_12 = arith.constant 0 : index
    %27 = vector.load %arg9[%c0_10, %c0_11, %c0_12] : memref<2x8x32xbf16, #tpu.memory_space<vmem>>, vector<2x8x8xbf16>
    tpu.vector_store %arg9[%c0_10, %c0_11, %c0_12], %26 {strides = array<i32>} : memref<2x8x32xbf16, #tpu.memory_space<vmem>>, vector<2x8x8xbf16>,
    %28 = vector.extract_strided_slice %9 {offsets = [0, 0, 8], sizes = [2, 8, 8], strides = [1, 1, 1]} : vector<2x8x96xbf16> to vector<2x8x8xbf16>
    %29 = vector.extract_strided_slice %9 {offsets = [0, 0, 40], sizes = [2, 8, 8], strides = [1, 1, 1]} : vector<2x8x96xbf16> to vector<2x8x8xbf16>
    %30 = vector.extract_strided_slice %9 {offsets = [0, 0, 72], sizes = [2, 8, 8], strides = [1, 1, 1]} : vector<2x8x96xbf16> to vector<2x8x8xbf16>
    "tpu.trace_start"() <{level = 10 : i32, message = "bqd,bkd->bqk"}> : () -> ()
    %cst_13 = arith.constant dense<0.000000e+00> : vector<2x8x8xf32>
    %31 = tpu.matmul %28, %29, %cst_13 {dimension_numbers = #tpu.dot_dimension_numbers<[2], [2], [1], [1], [0, 0, 0, 1, 1, 1], [0], [0]>} : vector<2x8x8xbf16>, vector<2x8x8xbf16>, vector<2x8x8xf32> -> vector<2x8x8xf32>
    "tpu.trace_stop"() : () -> ()
    %cst_14 = arith.constant dense<0xFF800000> : vector<2x8xf32>
    %32 = vector.multi_reduction <maximumf>, %31, %cst_14 [2] : vector<2x8x8xf32> to vector<2x8xf32>
    %33 = vector.shape_cast %32 : vector<2x8xf32> to vector<2x8x1xf32>
    %34 = vector.broadcast %33 : vector<2x8x1xf32> to vector<2x8x8xf32>
    %35 = arith.subf %31, %34 : vector<2x8x8xf32>
    %36 = math.exp %35 : vector<2x8x8xf32>
    %cst_15 = arith.constant dense<0.000000e+00> : vector<2x8xf32>
    %37 = vector.multi_reduction <add>, %36, %cst_15 [2] : vector<2x8x8xf32> to vector<2x8xf32>
    %38 = vector.shape_cast %37 : vector<2x8xf32> to vector<2x8x1xf32>
    %39 = tpu.reciprocal %38 {approx = true} : vector<2x8x1xf32> -> vector<2x8x1xf32>
    %40 = vector.broadcast %39 : vector<2x8x1xf32> to vector<2x8x8xf32>
    %41 = arith.mulf %36, %40 : vector<2x8x8xf32>
    %42 = arith.truncf %41 : vector<2x8x8xf32> to vector<2x8x8xbf16>
    "tpu.trace_start"() <{level = 10 : i32, message = "bqk,bkd->bqd"}> : () -> ()
    %cst_16 = arith.constant dense<0.000000e+00> : vector<2x8x8xf32>
    %43 = tpu.matmul %42, %30, %cst_16 {dimension_numbers = #tpu.dot_dimension_numbers<[2], [1], [1], [2], [0, 0, 0, 1, 1, 2], [0], [0]>} : vector<2x8x8xbf16>, vector<2x8x8xbf16>, vector<2x8x8xf32> -> vector<2x8x8xf32>
    "tpu.trace_stop"() : () -> ()
    %44 = arith.truncf %43 : vector<2x8x8xf32> to vector<2x8x8xbf16>
    %c0_17 = arith.constant 0 : index
    %c0_18 = arith.constant 0 : index
    %c8 = arith.constant 8 : index
    %45 = vector.load %arg9[%c0_17, %c0_18, %c8] : memref<2x8x32xbf16, #tpu.memory_space<vmem>>, vector<2x8x8xbf16>
    tpu.vector_store %arg9[%c0_17, %c0_18, %c8], %44 {strides = array<i32>} : memref<2x8x32xbf16, #tpu.memory_space<vmem>>, vector<2x8x8xbf16>,
    %46 = vector.extract_strided_slice %9 {offsets = [0, 0, 16], sizes = [2, 8, 8], strides = [1, 1, 1]} : vector<2x8x96xbf16> to vector<2x8x8xbf16>
    %47 = vector.extract_strided_slice %9 {offsets = [0, 0, 48], sizes = [2, 8, 8], strides = [1, 1, 1]} : vector<2x8x96xbf16> to vector<2x8x8xbf16>
    %48 = vector.extract_strided_slice %9 {offsets = [0, 0, 80], sizes = [2, 8, 8], strides = [1, 1, 1]} : vector<2x8x96xbf16> to vector<2x8x8xbf16>
    "tpu.trace_start"() <{level = 10 : i32, message = "bqd,bkd->bqk"}> : () -> ()
    %cst_19 = arith.constant dense<0.000000e+00> : vector<2x8x8xf32>
    %49 = tpu.matmul %46, %47, %cst_19 {dimension_numbers = #tpu.dot_dimension_numbers<[2], [2], [1], [1], [0, 0, 0, 1, 1, 1], [0], [0]>} : vector<2x8x8xbf16>, vector<2x8x8xbf16>, vector<2x8x8xf32> -> vector<2x8x8xf32>
    "tpu.trace_stop"() : () -> ()
    %cst_20 = arith.constant dense<0xFF800000> : vector<2x8xf32>
    %50 = vector.multi_reduction <maximumf>, %49, %cst_20 [2] : vector<2x8x8xf32> to vector<2x8xf32>
    %51 = vector.shape_cast %50 : vector<2x8xf32> to vector<2x8x1xf32>
    %52 = vector.broadcast %51 : vector<2x8x1xf32> to vector<2x8x8xf32>
    %53 = arith.subf %49, %52 : vector<2x8x8xf32>
    %54 = math.exp %53 : vector<2x8x8xf32>
    %cst_21 = arith.constant dense<0.000000e+00> : vector<2x8xf32>
    %55 = vector.multi_reduction <add>, %54, %cst_21 [2] : vector<2x8x8xf32> to vector<2x8xf32>
    %56 = vector.shape_cast %55 : vector<2x8xf32> to vector<2x8x1xf32>
    %57 = tpu.reciprocal %56 {approx = true} : vector<2x8x1xf32> -> vector<2x8x1xf32>
    %58 = vector.broadcast %57 : vector<2x8x1xf32> to vector<2x8x8xf32>
    %59 = arith.mulf %54, %58 : vector<2x8x8xf32>
    %60 = arith.truncf %59 : vector<2x8x8xf32> to vector<2x8x8xbf16>
    "tpu.trace_start"() <{level = 10 : i32, message = "bqk,bkd->bqd"}> : () -> ()
    %cst_22 = arith.constant dense<0.000000e+00> : vector<2x8x8xf32>
    %61 = tpu.matmul %60, %48, %cst_22 {dimension_numbers = #tpu.dot_dimension_numbers<[2], [1], [1], [2], [0, 0, 0, 1, 1, 2], [0], [0]>} : vector<2x8x8xbf16>, vector<2x8x8xbf16>, vector<2x8x8xf32> -> vector<2x8x8xf32>
    "tpu.trace_stop"() : () -> ()
    %62 = arith.truncf %61 : vector<2x8x8xf32> to vector<2x8x8xbf16>
    %c0_23 = arith.constant 0 : index
    %c0_24 = arith.constant 0 : index
    %c16 = arith.constant 16 : index
    %63 = vector.load %arg9[%c0_23, %c0_24, %c16] : memref<2x8x32xbf16, #tpu.memory_space<vmem>>, vector<2x8x8xbf16>
    tpu.vector_store %arg9[%c0_23, %c0_24, %c16], %62 {strides = array<i32>} : memref<2x8x32xbf16, #tpu.memory_space<vmem>>, vector<2x8x8xbf16>,
    %64 = vector.extract_strided_slice %9 {offsets = [0, 0, 24], sizes = [2, 8, 8], strides = [1, 1, 1]} : vector<2x8x96xbf16> to vector<2x8x8xbf16>
    %65 = vector.extract_strided_slice %9 {offsets = [0, 0, 56], sizes = [2, 8, 8], strides = [1, 1, 1]} : vector<2x8x96xbf16> to vector<2x8x8xbf16>
    %66 = vector.extract_strided_slice %9 {offsets = [0, 0, 88], sizes = [2, 8, 8], strides = [1, 1, 1]} : vector<2x8x96xbf16> to vector<2x8x8xbf16>
    "tpu.trace_start"() <{level = 10 : i32, message = "bqd,bkd->bqk"}> : () -> ()
    %cst_25 = arith.constant dense<0.000000e+00> : vector<2x8x8xf32>
    %67 = tpu.matmul %64, %65, %cst_25 {dimension_numbers = #tpu.dot_dimension_numbers<[2], [2], [1], [1], [0, 0, 0, 1, 1, 1], [0], [0]>} : vector<2x8x8xbf16>, vector<2x8x8xbf16>, vector<2x8x8xf32> -> vector<2x8x8xf32>
    "tpu.trace_stop"() : () -> ()
    %cst_26 = arith.constant dense<0xFF800000> : vector<2x8xf32>
    %68 = vector.multi_reduction <maximumf>, %67, %cst_26 [2] : vector<2x8x8xf32> to vector<2x8xf32>
    %69 = vector.shape_cast %68 : vector<2x8xf32> to vector<2x8x1xf32>
    %70 = vector.broadcast %69 : vector<2x8x1xf32> to vector<2x8x8xf32>
    %71 = arith.subf %67, %70 : vector<2x8x8xf32>
    %72 = math.exp %71 : vector<2x8x8xf32>
    %cst_27 = arith.constant dense<0.000000e+00> : vector<2x8xf32>
    %73 = vector.multi_reduction <add>, %72, %cst_27 [2] : vector<2x8x8xf32> to vector<2x8xf32>
    %74 = vector.shape_cast %73 : vector<2x8xf32> to vector<2x8x1xf32>
    %75 = tpu.reciprocal %74 {approx = true} : vector<2x8x1xf32> -> vector<2x8x1xf32>
    %76 = vector.broadcast %75 : vector<2x8x1xf32> to vector<2x8x8xf32>
    %77 = arith.mulf %72, %76 : vector<2x8x8xf32>
    %78 = arith.truncf %77 : vector<2x8x8xf32> to vector<2x8x8xbf16>
    "tpu.trace_start"() <{level = 10 : i32, message = "bqk,bkd->bqd"}> : () -> ()
    %cst_28 = arith.constant dense<0.000000e+00> : vector<2x8x8xf32>
    %79 = tpu.matmul %78, %66, %cst_28 {dimension_numbers = #tpu.dot_dimension_numbers<[2], [1], [1], [2], [0, 0, 0, 1, 1, 2], [0], [0]>} : vector<2x8x8xbf16>, vector<2x8x8xbf16>, vector<2x8x8xf32> -> vector<2x8x8xf32>
    "tpu.trace_stop"() : () -> ()
    %80 = arith.truncf %79 : vector<2x8x8xf32> to vector<2x8x8xbf16>
    %c0_29 = arith.constant 0 : index
    %c0_30 = arith.constant 0 : index
    %c24 = arith.constant 24 : index
    %81 = vector.load %arg9[%c0_29, %c0_30, %c24] : memref<2x8x32xbf16, #tpu.memory_space<vmem>>, vector<2x8x8xbf16>
    tpu.vector_store %arg9[%c0_29, %c0_30, %c24], %80 {strides = array<i32>} : memref<2x8x32xbf16, #tpu.memory_space<vmem>>, vector<2x8x8xbf16>,
    %c0_31 = arith.constant 0 : index
    %c0_32 = arith.constant 0 : index
    %c0_33 = arith.constant 0 : index
    %82 = vector.load %arg9[%c0_31, %c0_32, %c0_33] : memref<2x8x32xbf16, #tpu.memory_space<vmem>>, vector<2x8x32xbf16>
    %83 = vector.shape_cast %82 : vector<2x8x32xbf16> to vector<16x32xbf16>
    %c0_34 = arith.constant 0 : index
    %c0_35 = arith.constant 0 : index
    %84 = vector.load %arg4[%c0_34, %c0_35] : memref<32x32xbf16, #tpu.memory_space<vmem>>, vector<32x32xbf16>
    %cst_36 = arith.constant dense<0.000000e+00> : vector<16x32xf32>
    %85 = tpu.matmul %83, %84, %cst_36 {dimension_numbers = #tpu.dot_dimension_numbers<[1], [0], [0], [1], [0, 0, 1, 1], [], []>} : vector<16x32xbf16>, vector<32x32xbf16>, vector<16x32xf32> -> vector<16x32xf32>
    %86 = arith.addf %1, %85 : vector<16x32xf32>
    %c0_37 = arith.constant 0 : index
    %c0_38 = arith.constant 0 : index
    %87 = vector.load %arg5[%c0_37, %c0_38] : memref<1x32xf32, #tpu.memory_space<vmem>>, vector<1x32xf32>
    %88 = vector.broadcast %87 : vector<1x32xf32> to vector<16x32xf32>
    %89 = arith.addf %86, %88 : vector<16x32xf32>
    %90 = vector.shape_cast %89 : vector<16x32xf32> to vector<2x8x32xf32>
    %cst_39 = arith.constant dense<0.000000e+00> : vector<2x8xf32>
    %91 = vector.multi_reduction <add>, %90, %cst_39 [2] : vector<2x8x32xf32> to vector<2x8xf32>
    %92 = vector.shape_cast %91 : vector<2x8xf32> to vector<2x8x1xf32>
    %cst_40 = arith.constant dense<0.000000e+00> : vector<2x1xf32>
    %93 = vector.multi_reduction <add>, %92, %cst_40 [1] : vector<2x8x1xf32> to vector<2x1xf32>
    %94 = vector.shape_cast %93 : vector<2x1xf32> to vector<2x1x1xf32>
    %95 = arith.mulf %90, %90 : vector<2x8x32xf32>
    %cst_41 = arith.constant dense<0.000000e+00> : vector<2x8xf32>
    %96 = vector.multi_reduction <add>, %95, %cst_41 [2] : vector<2x8x32xf32> to vector<2x8xf32>
    %97 = vector.shape_cast %96 : vector<2x8xf32> to vector<2x8x1xf32>
    %cst_42 = arith.constant dense<0.000000e+00> : vector<2x1xf32>
    %98 = vector.multi_reduction <add>, %97, %cst_42 [1] : vector<2x8x1xf32> to vector<2x1xf32>
    %99 = vector.shape_cast %98 : vector<2x1xf32> to vector<2x1x1xf32>
    %cst_43 = arith.constant 3.906250e-03 : f32
    %100 = vector.broadcast %cst_43 : f32 to vector<2x1x1xf32>
    %101 = arith.mulf %94, %100 : vector<2x1x1xf32>
    %cst_44 = arith.constant 3.906250e-03 : f32
    %102 = vector.broadcast %cst_44 : f32 to vector<2x1x1xf32>
    %103 = arith.mulf %99, %102 : vector<2x1x1xf32>
    %104 = arith.mulf %101, %101 : vector<2x1x1xf32>
    %105 = arith.subf %103, %104 : vector<2x1x1xf32>
    %cst_45 = arith.constant 0.000000e+00 : f32
    %106 = vector.broadcast %cst_45 : f32 to vector<2x1x1xf32>
    %107 = arith.maximumf %105, %106 : vector<2x1x1xf32>
    %108 = vector.broadcast %101 : vector<2x1x1xf32> to vector<2x8x32xf32>
    %109 = arith.subf %90, %108 : vector<2x8x32xf32>
    %cst_46 = arith.constant 9.99999996E-13 : f32
    %110 = vector.broadcast %cst_46 : f32 to vector<2x1x1xf32>
    %111 = arith.addf %107, %110 : vector<2x1x1xf32>
    %112 = math.rsqrt %111 : vector<2x1x1xf32>
    %113 = vector.broadcast %112 : vector<2x1x1xf32> to vector<2x8x32xf32>
    %114 = arith.mulf %109, %113 : vector<2x8x32xf32>
    %c0_47 = arith.constant 0 : index
    %c0_48 = arith.constant 0 : index
    %115 = vector.load %arg6[%c0_47, %c0_48] : memref<1x32xf32, #tpu.memory_space<vmem>>, vector<1x32xf32>
    %116 = vector.shape_cast %115 : vector<1x32xf32> to vector<1x1x32xf32>
    %c0_49 = arith.constant 0 : index
    %c0_50 = arith.constant 0 : index
    %117 = vector.load %arg7[%c0_49, %c0_50] : memref<1x32xf32, #tpu.memory_space<vmem>>, vector<1x32xf32>
    %118 = vector.shape_cast %117 : vector<1x32xf32> to vector<1x1x32xf32>
    %119 = vector.broadcast %116 : vector<1x1x32xf32> to vector<2x8x32xf32>
    %120 = arith.mulf %119, %114 : vector<2x8x32xf32>
    %121 = vector.broadcast %118 : vector<1x1x32xf32> to vector<2x8x32xf32>
    %122 = arith.addf %120, %121 : vector<2x8x32xf32>
    %c0_51 = arith.constant 0 : index
    %c0_52 = arith.constant 0 : index
    %c0_53 = arith.constant 0 : index
    %123 = vector.load %arg8[%c0_51, %c0_52, %c0_53] : memref<2x8x32xf32, #tpu.memory_space<vmem>>, vector<2x8x32xf32>
    tpu.vector_store %arg8[%c0_51, %c0_52, %c0_53], %122 {strides = array<i32>} : memref<2x8x32xf32, #tpu.memory_space<vmem>>, vector<2x8x32xf32>,
    return
  }
  func.func @transform_0(%arg0: i32) -> (i32, i32, i32) {
    %c0_i32 = arith.constant 0 : i32
    %c0_i32_0 = arith.constant 0 : i32
    %c0_i32_1 = arith.constant 0 : i32
    return %arg0, %c0_i32, %c0_i32_0 : i32, i32, i32
  }
  func.func @transform_1(%arg0: i32) -> (i32, i32) {
    %c0_i32 = arith.constant 0 : i32
    %c0_i32_0 = arith.constant 0 : i32
    %c0_i32_1 = arith.constant 0 : i32
    return %c0_i32, %c0_i32_0 : i32, i32
  }
  func.func @transform_2(%arg0: i32) -> (i32, i32) {
    %c0_i32 = arith.constant 0 : i32
    %c0_i32_0 = arith.constant 0 : i32
    %c0_i32_1 = arith.constant 0 : i32
    return %c0_i32, %c0_i32_0 : i32, i32
  }
  func.func @transform_3(%arg0: i32) -> (i32, i32) {
    %c0_i32 = arith.constant 0 : i32
    %c0_i32_0 = arith.constant 0 : i32
    %c0_i32_1 = arith.constant 0 : i32
    return %c0_i32, %c0_i32_0 : i32, i32
  }
  func.func @transform_4(%arg0: i32) -> (i32, i32) {
    %c0_i32 = arith.constant 0 : i32
    %c0_i32_0 = arith.constant 0 : i32
    %c0_i32_1 = arith.constant 0 : i32
    return %c0_i32, %c0_i32_0 : i32, i32
  }
  func.func @transform_5(%arg0: i32) -> (i32, i32) {
    %c0_i32 = arith.constant 0 : i32
    %c0_i32_0 = arith.constant 0 : i32
    %c0_i32_1 = arith.constant 0 : i32
    return %c0_i32, %c0_i32_0 : i32, i32
  }
  func.func @transform_6(%arg0: i32) -> (i32, i32) {
    %c0_i32 = arith.constant 0 : i32
    %c0_i32_0 = arith.constant 0 : i32
    %c0_i32_1 = arith.constant 0 : i32
    return %c0_i32, %c0_i32_0 : i32, i32
  }
  func.func @transform_7(%arg0: i32) -> (i32, i32, i32) {
    %c0_i32 = arith.constant 0 : i32
    %c0_i32_0 = arith.constant 0 : i32
    %c0_i32_1 = arith.constant 0 : i32
    return %arg0, %c0_i32, %c0_i32_0 : i32, i32, i32
  }
}

</mosaic_0001>

<bundles_post_ra>
// kernel: tpu_custom_call.1
= control target key start
LH: loop header
LB: loop body
LE: loop exit
PB: predicated region body
PF: predicated region fallthrough
CT: control target
= control target key end

     0   :  { %12 = vsyncpa [#allocation4], 0  ;;  %s1906_s0 = inlined_call_operand.hbm [shape: f32[2,8,32], index: 0, kind: input, shape index: {}]   ;;  %s1907_s1 = inlined_call_operand.hbm [shape: bf16[32,96], index: 1, kind: input, shape index: {}]   ;;  %s1908_s2 = inlined_call_operand.vmem [shape: f32[1,96], index: 2, kind: input, shape index: {}]   ;;  %s1909_s3 = inlined_call_operand.hbm [shape: bf16[32,32], index: 3, kind: input, shape index: {}]   ;;  %s1910_s4 = inlined_call_operand.vmem [shape: f32[1,32], index: 4, kind: input, shape index: {}]   ;;  %s1911_s5 = inlined_call_operand.vmem [shape: f32[1,32], index: 5, kind: input, shape index: {}]   ;;  %s1912_s6 = inlined_call_operand.vmem [shape: f32[1,32], index: 6, kind: input, shape index: {}]   ;;  %s1913_s7 = inlined_call_operand.hbm [shape: f32[2,8,32], index: 7, kind: output, shape index: {}]  }
   0x1   :  { %13 = vsyncpa [#allocation7], 0 }
   0x2   :  { %14 = vsyncpa [#allocation5], 0  ;;  %s1602_s24 = smov [#allocation6]   ;;  %s1508_s28 = scalar_lea.hbm %s1907_s1, 256 }
   0x3   :  { %s32_s25 = sshll.u32 %s1602_s24, 4  ;;  %p1509_p0 = scmp.ne.s32.totalorder %s1907_s1, %s1508_s28  ;;  %s33_s25 = int_to_ptr.vmem [resolvable:$true] %s32_s25 }
   0x4   :  { %p1512_p1 = scmp.lt.u32.totalorder %s1508_s28, %s1907_s1 }
   0x6   :  { %p1514_p2 = pnand %p1512_p1, %p1509_p0 }
   0x8   :  { %1517 = shalt.err (!%p1514_p2)
}
   0x9   :  { %s1518_s10 = scalar_lea.vmem %s33_s25, 256  ;;  %p1523_p4 = scmp.lt.s32.totalorder %s33_s25, %s33_s25 }
   0xa   :  { %p1519_p3 = scmp.ne.s32.totalorder %s33_s25, %s1518_s10  ;;  %p1524_p5 = scmp.lt.s32.totalorder %s1518_s10, %s1518_s10 }
   0xc   :  { %p1525_p6 = por %p1524_p5, %p1523_p4 }
   0xe   :  { %p1526_p7 = pnand %p1525_p6, %p1519_p3 }
  0x10   :  { %1529 = shalt.err (!%p1526_p7)
}
  0x11   :  { %s1603_s11 = smov 64   ;;  %s1604_s12 = smov 4  }
  0x12   :  { %38 = dma.hbm_to_vmem [thread:$0]  %s1907_s1, 256, %s33_s25, [#allocation7], %s1603_s11, %s1603_s11, %s1604_s12  }
  0x13   :  { %s1605_s15 = smov [#allocation3]   ;;  %s1530_s19 = scalar_lea.hbm %s1906_s0, 256 }
  0x14   :  { %s20_s16 = sshll.u32 %s1605_s15, 4  ;;  %p1531_p8 = scmp.ne.s32.totalorder %s1906_s0, %s1530_s19  ;;  %s21_s16 = int_to_ptr.vmem [resolvable:$true] %s20_s16 }
  0x15   :  { %p1534_p9 = scmp.lt.u32.totalorder %s1530_s19, %s1906_s0 }
  0x17   :  { %p1536_p10 = pnand %p1534_p9, %p1531_p8 }
  0x19   :  { %1539 = shalt.err (!%p1536_p10)
}
  0x1a   :  { %s1540_s24 = scalar_lea.vmem %s21_s16, 256  ;;  %p1545_p12 = scmp.lt.s32.totalorder %s21_s16, %s21_s16 }
  0x1b   :  { %p1541_p11 = scmp.ne.s32.totalorder %s21_s16, %s1540_s24  ;;  %p1546_p13 = scmp.lt.s32.totalorder %s1540_s24, %s1540_s24 }
  0x1d   :  { %p1547_p0 = por %p1546_p13, %p1545_p12 }
  0x1f   :  { %p1548_p1 = pnand %p1547_p0, %p1541_p11 }
  0x21   :  { %1551 = shalt.err (!%p1548_p1)
}
  0x22   :  { %s1606_s1 = smov 128   ;;  %s1607_s25 = smov 8  }
  0x23   :  { %26 = dma.hbm_to_vmem [thread:$0]  %s1906_s0, 256, %s21_s16, [#allocation4], %s1606_s1, %s1606_s1, %s1607_s25  }
  0x24   :  { %s1608_s28 = smov [#allocation8]   ;;  %s1552_s9 = scalar_lea.hbm %s1909_s3, 256 }
  0x25   :  { %s46_s29 = sshll.u32 %s1608_s28, 4  ;;  %p1553_p2 = scmp.ne.s32.totalorder %s1909_s3, %s1552_s9  ;;  %s47_s29 = int_to_ptr.vmem [resolvable:$true] %s46_s29 }
  0x26   :  { %p1556_p3 = scmp.lt.u32.totalorder %s1552_s9, %s1909_s3 }
  0x28   :  { %p1558_p4 = pnand %p1556_p3, %p1553_p2 }
  0x2a   :  { %1561 = shalt.err (!%p1558_p4)
}
  0x2b   :  { %s1562_s17 = scalar_lea.vmem %s47_s29, 256  ;;  %p1567_p6 = scmp.lt.s32.totalorder %s47_s29, %s47_s29 }
  0x2c   :  { %p1563_p5 = scmp.ne.s32.totalorder %s47_s29, %s1562_s17  ;;  %p1568_p7 = scmp.lt.s32.totalorder %s1562_s17, %s1562_s17 }
  0x2e   :  { %p1569_p8 = por %p1568_p7, %p1567_p6 }
  0x30   :  { %p1570_p9 = pnand %p1569_p8, %p1563_p5 }
  0x32   :  { %1573 = shalt.err (!%p1570_p9)
}
  0x33   :  { %52 = dma.hbm_to_vmem [thread:$0]  %s1909_s3, 256, %s47_s29, [#allocation7], %s1603_s11, %s1603_s11, %s1604_s12  }
  0x34   :  { %1596 = dma.done.wait [#allocation4], 256  }
  0x35   :  { %1597 = vsyncadd [#allocation4], 4294967040 }
  0x36   :  { %1598 = dma.done.wait [#allocation7], 512  }
  0x37   :  { %1599 = vsyncadd [#allocation7], 4294966784  ;;  %v1609_v0 = vmov 0.0   ;;  %vm1610_vm0 = vmmov 0   ;;  %v1467_v1 = vld [vmem:[#allocation6] sm:$0xff]   ;;  %v1468_v2 = vld [vmem:[#allocation6 + $0x8] sm:$0xff]  }
  0x38   :  { %1333 = vmatprep.subr.bf16.mxu0 %v1609_v0  ;;  %1337 = vmatprep.mubr.msk.bf16.mxu0 %vm1610_vm0, %v1609_v0  ;;  %v1715_v3 = vld [vmem:[#allocation3] sm:$0xff]  ;;  %v1717_v4 = vld [vmem:[#allocation3 + $0x8] sm:$0xff]  ;;  %vm95_vm1 = vcmask 261120   ;;  %v1252_v6 = vld [vmem:[%s1908_s2] ss:$0 sm:$0xff]  ;;  %s1611_s18 = smov 96  }
  0x39   :  { %1341 = vmatprep.subr.bf16.mxu1 %v1609_v0  ;;  %1343 = vmatprep.mubr.msk.bf16.mxu1 %vm1610_vm0, %v1609_v0  ;;  %v71_v5 = vpack.c.bf16 %v1717_v4, %v1715_v3  ;;  %vm148_vm2 = vcmask 64512   ;;  %s1612_s2 = smov 88   ;;  %vm272_vm3 = vcmask 1043456   ;;  %vm366_vm4 = vcmask 60416   ;;  %s1614_s19 = smov 56  }
  0x3a   :  { %1334 = vmatpush3.bf16.msra.mxu0 %v1467_v1  ;;  %s1615_s20 = smov 80   ;;  %s1616_s21 = smov 112   ;;  %vm603_vm5 = vcmask 126016   ;;  %vm840_vm6 = vcmask 191616   ;;  %vm1077_vm7 = vcmask 257216  }
  0x3b   :  { %1335 = vmatprep.subr.bf16.mxu0 %v1609_v0  ;;  %s1617_s22 = smov 48   ;;  %s1618_s23 = smov 72  }
  0x3c   :  { %s1619_s24 = smov 104   ;;  %s1620_s26 = smov 40  }
  0x3d   :  { %s1621_s27 = smov 16   ;;  %s1622_s28 = smov 24  }
  0x3e   :  { %1336 = vmatpush3.bf16.msra.mxu0 %v1468_v2  ;;  %s1623_s13 = smov [#allocation9]  }
  0x3f   :  { %1347 = vmatprep.subr.bf16.mxu0 %v1609_v0  ;;  %s1239_s14 = sshll.u32 %s1623_s13, 4  ;;  %s1240_s14 = int_to_ptr.vmem [resolvable:$true] %s1239_s14 }
  0x40   :  { %p1579_p11 = scmp.lt.s32.totalorder %s1240_s14, %s1240_s14 }
  0x41   :  { %1338 = vmatmul.mubr.msk.bf16.vlgmr.msra.gmra.mrb[0].mxu0 %vm95_vm1, %v71_v5 }
  0x42   :  { %1349 = vmatprep.mubr.msk.bf16.mxu0 %vm1610_vm0, %v1609_v0 }
 0x114   :  { %v133_v7 = vpop.f32.mrb[0].mxu0 }
 0x115   :  { %v134_v8 = vadd.f32 %v1252_v6, %v133_v7  ;;  %v1339_v9 = vpop.f32.mrb[1].mxu0 }
 0x116   :  { %v136_v10 = vpop.f32.mrb[2].mxu0 }
 0x117   :  { %v1729_v11 = vpack.c.bf16 %v134_v8, %v134_v8  ;;  %v137_v12 = vadd.f32 %v1252_v6, %v136_v10  ;;  %v1340_v13 = vpop.f32.mrb[3].mxu0 }
 0x119   :  { %146 = vrot.lane.b32.xlu0 %v1729_v11, %s1611_s18  ;;  %v1732_v14 = vpack.c.bf16 %v137_v12, %v137_v12 }
 0x11d   :  { %195 = vrot.lane.b32.xlu0 %v1732_v14, %s1611_s18 }
 0x18b   :  { %v147_v15 = vpop.permute.xlu0 %146 }
 0x18c   :  { %v153_v16 = vsel %vm148_vm2, %v147_v15, 0 }
 0x18d   :  { %1342 = vmatpush3.bf16.xpose.msra.mxu1 %v153_v16 }
 0x18e   :  { %1353 = vmatprep.subr.bf16.mxu1 %v1609_v0 }
 0x18f   :  { %v196_v17 = vpop.permute.xlu0 %195 }
 0x190   :  { %v201_v18 = vsel %vm148_vm2, %v196_v17, 0 }
 0x191   :  { %1348 = vmatpush3.bf16.xpose.msra.mxu0 %v201_v18 }
 0x192   :  { %1359 = vmatprep.subr.bf16.mxu0 %v1609_v0 }
 0x194   :  { %1344 = vmatmul.mubr.msk.bf16.vlgmr.msra.gmra.mrb[0].mxu1 %vm148_vm2, %v1729_v11 }
 0x195   :  { %1355 = vmatprep.mubr.msk.bf16.mxu1 %vm1610_vm0, %v1609_v0 }
 0x198   :  { %1350 = vmatmul.mubr.msk.bf16.vlgmr.msra.gmra.mrb[4].mxu0 %vm148_vm2, %v1732_v14 }
 0x199   :  { %1361 = vmatprep.mubr.msk.bf16.mxu0 %vm1610_vm0, %v1609_v0 }
 0x267   :  { %v189_v19 = vpop.f32.mrb[0].mxu1 }
 0x268   :  { %v1345_v20 = vpop.f32.mrb[1].mxu1  ;;  %v243_v21 = vsel %vm148_vm2, %v189_v19, -inf }
 0x269   :  { %244 = vmax.xlane.f32.xlu1 %v243_v21  ;;  %v192_v22 = vpop.f32.mrb[2].mxu1 }
 0x26a   :  { %v1346_v23 = vpop.f32.mrb[3].mxu1 }
 0x26b   :  { %v237_v24 = vpop.f32.mrb[4].mxu0 }
 0x26c   :  { %v1351_v25 = vpop.f32.mrb[5].mxu0  ;;  %v246_v26 = vsel %vm148_vm2, %v237_v24, -inf }
 0x26d   :  { %247 = vmax.xlane.f32.xlu1 %v246_v26  ;;  %v240_v27 = vpop.f32.mrb[6].mxu0 }
 0x26e   :  { %v1352_v28 = vpop.f32.mrb[7].mxu0 }
 0x27e   :  { %267 = vrot.lane.b32.xlu1 %v1729_v11, %s1603_s11 }
 0x282   :  { %316 = vrot.lane.b32.xlu1 %v1732_v14, %s1603_s11  ;;  %s1613_s11 = smov 120  }
 0x286   :  { %371 = vrot.lane.b32.xlu1 %v1729_v11, %s1612_s2 }
 0x2f6   :  { %v245_v29 = vpop.xlane.xlu1 %244 }
 0x2f7   :  { %v249_v30 = vsub.f32 %v189_v19, %v245_v29 }
 0x2f9   :  { %v251_v31 = vmul.f32 1.442695, %v249_v30 }
 0x2fa   :  { %v248_v32 = vpop.xlane.xlu1 %247 }
 0x2fb   :  { %1472 = vpow2.f32 %v251_v31  ;;  %v250_v33 = vsub.f32 %v237_v24, %v248_v32 }
 0x2fd   :  { %v253_v34 = vmul.f32 1.442695, %v250_v33 }
 0x2fe   :  { %v268_v35 = vpop.permute.xlu1 %267 }
 0x2ff   :  { %1474 = vpow2.f32 %v253_v34  ;;  %v274_v36 = vsel %vm272_vm3, %v268_v35, 0 }
 0x300   :  { %1354 = vmatpush3.bf16.msra.mxu1 %v274_v36 }
 0x301   :  { %1365 = vmatprep.subr.bf16.mxu1 %v1609_v0 }
 0x302   :  { %v317_v37 = vpop.permute.xlu1 %316 }
 0x303   :  { %v322_v38 = vsel %vm272_vm3, %v317_v37, 0 }
 0x304   :  { %1360 = vmatpush3.bf16.msra.mxu0 %v322_v38 }
 0x305   :  { %v1473_v39 = vpop.eup %1472  ;;  %1371 = vmatprep.subr.bf16.mxu0 %v1609_v0 }
 0x306   :  { %v255_v40 = vsel %vm148_vm2, %v1473_v39, 0.0  ;;  %v372_v43 = vpop.permute.xlu1 %371 }
 0x307   :  { %256 = vadd.xlane.f32.xlu0 %v255_v40  ;;  %v377_v50 = vsel %vm148_vm2, %v372_v43, 0 }
 0x309   :  { %v1475_v41 = vpop.eup %1474 }
 0x30a   :  { %v258_v42 = vsel %vm148_vm2, %v1475_v41, 0.0 }
 0x30b   :  { %259 = vadd.xlane.f32.xlu1 %v258_v42 }
 0x31c   :  { %421 = vrot.lane.b32.xlu1 %v1732_v14, %s1612_s2 }
 0x31d   :  { %369 = vrot.lane.b32.xlu0 %v1729_v11, %s1613_s11 }
 0x320   :  { %419 = vrot.lane.b32.xlu1 %v1732_v14, %s1613_s11 }
 0x394   :  { %v257_v44 = vpop.xlane.xlu0 %256 }
 0x395   :  { %1476 = vrcp.f32 %v257_v44 }
 0x398   :  { %v260_v45 = vpop.xlane.xlu1 %259  ;;  %v370_v55 = vpop.permute.xlu0 %369 }
 0x399   :  { %1478 = vrcp.f32 %v260_v45 }
 0x39c   :  { %v422_v52 = vpop.permute.xlu1 %421 }
 0x39d   :  { %v427_v54 = vsel %vm148_vm2, %v422_v52, 0 }
 0x39f   :  { %v1477_v46 = vpop.eup %1476 }
 0x3a0   :  { %v263_v47 = vmul.f32 %v1477_v46, %v1473_v39  ;;  %v420_v56 = vpop.permute.xlu1 %419 }
 0x3a2   :  { %v265_v48 = vpack.c.bf16 %v263_v47, %v263_v47 }
 0x3a3   :  { %v1479_v49 = vpop.eup %1478 }
 0x3a4   :  { %v264_v51 = vmul.f32 %v1479_v49, %v1475_v41  ;;  %1356 = vmatmul.mubr.msk.bf16.vlgmr.msra.gmra.mrb[4].mxu1 %vm148_vm2, %v265_v48 }
 0x3a5   :  { %1366 = vmatpush3.bf16.xpose.msra.mxu1 %v377_v50  ;;  %1367 = vmatprep.mubr.msk.bf16.mxu1 %vm1610_vm0, %v1609_v0 }
 0x3a6   :  { %v266_v53 = vpack.c.bf16 %v264_v51, %v264_v51  ;;  %1377 = vmatprep.subr.bf16.mxu1 %v1609_v0 }
 0x3a8   :  { %1362 = vmatmul.mubr.msk.bf16.vlgmr.msra.gmra.mrb[8].mxu0 %vm148_vm2, %v266_v53 }
 0x3a9   :  { %1372 = vmatpush3.bf16.xpose.msra.mxu0 %v427_v54  ;;  %1373 = vmatprep.mubr.msk.bf16.mxu0 %vm1610_vm0, %v1609_v0 }
 0x3aa   :  { %1383 = vmatprep.subr.bf16.mxu0 %v1609_v0 }
 0x3ac   :  { %1368 = vmatmul.mubr.msk.bf16.vlgmr.msra.gmra.mrb[8].mxu1 %vm148_vm2, %v370_v55 }
 0x3ad   :  { %1379 = vmatprep.mubr.msk.bf16.mxu1 %vm1610_vm0, %v1609_v0 }
 0x3b0   :  { %1374 = vmatmul.mubr.msk.bf16.vlgmr.msra.gmra.mrb[12].mxu0 %vm148_vm2, %v420_v56 }
 0x3b1   :  { %1385 = vmatprep.mubr.msk.bf16.mxu0 %vm1610_vm0, %v1609_v0 }
 0x477   :  { %v310_v57 = vpop.f32.mrb[4].mxu1 }
 0x478   :  { %v364_v58 = vpack.c.bf16 %v310_v57, %v310_v57  ;;  %v1357_v59 = vpop.f32.mrb[5].mxu1 }
 0x479   :  { %v313_v60 = vpop.f32.mrb[6].mxu1 }
 0x47a   :  { %367 = vst.msk [vmem:[#allocation2] sm:$0xf] %vm366_vm4, %v364_v58  ;;  %v1358_v61 = vpop.f32.mrb[7].mxu1 }
 0x47b   :  { %v358_v62 = vpop.f32.mrb[8].mxu0 }
 0x47c   :  { %v365_v63 = vpack.c.bf16 %v358_v62, %v358_v62  ;;  %v1363_v1 = vpop.f32.mrb[9].mxu0 }
 0x47d   :  { %v361_v2 = vpop.f32.mrb[10].mxu0 }
 0x47e   :  { %368 = vst.msk [vmem:[#allocation2 + $0x4] sm:$0xf] %vm366_vm4, %v365_v63  ;;  %v1364_v5 = vpop.f32.mrb[11].mxu0 }
 0x47f   :  { %v413_v6 = vpop.f32.mrb[8].mxu1 }
 0x480   :  { %v1369_v7 = vpop.f32.mrb[9].mxu1  ;;  %v469_v8 = vsel %vm148_vm2, %v413_v6, -inf }
 0x481   :  { %470 = vmax.xlane.f32.xlu1 %v469_v8  ;;  %v416_v9 = vpop.f32.mrb[10].mxu1 }
 0x482   :  { %v1370_v10 = vpop.f32.mrb[11].mxu1 }
 0x483   :  { %v463_v12 = vpop.f32.mrb[12].mxu0 }
 0x484   :  { %v1375_v13 = vpop.f32.mrb[13].mxu0  ;;  %v472_v15 = vsel %vm148_vm2, %v463_v12, -inf }
 0x485   :  { %473 = vmax.xlane.f32.xlu0 %v472_v15  ;;  %v466_v16 = vpop.f32.mrb[14].mxu0 }
 0x486   :  { %v1376_v17 = vpop.f32.mrb[15].mxu0 }
 0x492   :  { %493 = vrot.lane.b32.xlu1 %v1729_v11, %s1614_s19 }
 0x496   :  { %608 = vrot.lane.b32.xlu1 %v1729_v11, %s1615_s20 }
 0x49b   :  { %541 = vrot.lane.b32.xlu0 %v1732_v14, %s1614_s19 }
 0x49f   :  { %606 = vrot.lane.b32.xlu0 %v1729_v11, %s1616_s21 }
 0x50e   :  { %v471_v18 = vpop.xlane.xlu1 %470 }
 0x50f   :  { %v475_v19 = vsub.f32 %v413_v6, %v471_v18 }
 0x511   :  { %v477_v20 = vmul.f32 1.442695, %v475_v19 }
 0x512   :  { %v494_v21 = vpop.permute.xlu1 %493  ;;  %v474_v22 = vpop.xlane.xlu0 %473 }
 0x513   :  { %1480 = vpow2.f32 %v477_v20  ;;  %v499_v23 = vsel %vm272_vm3, %v494_v21, 0  ;;  %v476_v24 = vsub.f32 %v463_v12, %v474_v22 }
 0x514   :  { %1378 = vmatpush3.bf16.msra.mxu1 %v499_v23 }
 0x515   :  { %v479_v25 = vmul.f32 1.442695, %v476_v24  ;;  %1389 = vmatprep.subr.bf16.mxu1 %v1609_v0 }
 0x516   :  { %v542_v26 = vpop.permute.xlu0 %541  ;;  %v609_v32 = vpop.permute.xlu1 %608 }
 0x517   :  { %1482 = vpow2.f32 %v479_v25  ;;  %v547_v27 = vsel %vm272_vm3, %v542_v26, 0  ;;  %v614_v39 = vsel %vm148_vm2, %v609_v32, 0 }
 0x518   :  { %1384 = vmatpush3.bf16.msra.mxu0 %v547_v27 }
 0x519   :  { %1395 = vmatprep.subr.bf16.mxu0 %v1609_v0 }
 0x51a   :  { %v607_v44 = vpop.permute.xlu0 %606 }
 0x51d   :  { %v1481_v28 = vpop.eup %1480 }
 0x51e   :  { %v481_v29 = vsel %vm148_vm2, %v1481_v28, 0.0 }
 0x51f   :  { %482 = vadd.xlane.f32.xlu1 %v481_v29 }
 0x521   :  { %v1483_v30 = vpop.eup %1482 }
 0x522   :  { %v484_v31 = vsel %vm148_vm2, %v1483_v30, 0.0 }
 0x523   :  { %485 = vadd.xlane.f32.xlu1 %v484_v31 }
 0x534   :  { %658 = vrot.lane.b32.xlu1 %v1732_v14, %s1615_s20 }
 0x538   :  { %656 = vrot.lane.b32.xlu1 %v1732_v14, %s1616_s21 }
 0x5ac   :  { %v483_v33 = vpop.xlane.xlu1 %482 }
 0x5ad   :  { %1484 = vrcp.f32 %v483_v33 }
 0x5b0   :  { %v486_v34 = vpop.xlane.xlu1 %485 }
 0x5b1   :  { %1486 = vrcp.f32 %v486_v34 }
 0x5b4   :  { %v659_v41 = vpop.permute.xlu1 %658 }
 0x5b5   :  { %v664_v43 = vsel %vm148_vm2, %v659_v41, 0 }
 0x5b7   :  { %v1485_v35 = vpop.eup %1484 }
 0x5b8   :  { %v489_v36 = vmul.f32 %v1485_v35, %v1481_v28  ;;  %v657_v45 = vpop.permute.xlu1 %656 }
 0x5ba   :  { %v491_v37 = vpack.c.bf16 %v489_v36, %v489_v36 }
 0x5bb   :  { %v1487_v38 = vpop.eup %1486 }
 0x5bc   :  { %v490_v40 = vmul.f32 %v1487_v38, %v1483_v30  ;;  %1380 = vmatmul.mubr.msk.bf16.vlgmr.msra.gmra.mrb[12].mxu1 %vm148_vm2, %v491_v37 }
 0x5bd   :  { %1390 = vmatpush3.bf16.xpose.msra.mxu1 %v614_v39  ;;  %1391 = vmatprep.mubr.msk.bf16.mxu1 %vm1610_vm0, %v1609_v0 }
 0x5be   :  { %v492_v42 = vpack.c.bf16 %v490_v40, %v490_v40  ;;  %1401 = vmatprep.subr.bf16.mxu1 %v1609_v0 }
 0x5c0   :  { %1386 = vmatmul.mubr.msk.bf16.vlgmr.msra.gmra.mrb[16].mxu0 %vm148_vm2, %v492_v42 }
 0x5c1   :  { %1396 = vmatpush3.bf16.xpose.msra.mxu0 %v664_v43  ;;  %1397 = vmatprep.mubr.msk.bf16.mxu0 %vm1610_vm0, %v1609_v0 }
 0x5c2   :  { %1407 = vmatprep.subr.bf16.mxu0 %v1609_v0 }
 0x5c4   :  { %1392 = vmatmul.mubr.msk.bf16.vlgmr.msra.gmra.mrb[16].mxu1 %vm148_vm2, %v607_v44 }
 0x5c5   :  { %1403 = vmatprep.mubr.msk.bf16.mxu1 %vm1610_vm0, %v1609_v0 }
 0x5c8   :  { %1398 = vmatmul.mubr.msk.bf16.vlgmr.msra.gmra.mrb[20].mxu0 %vm148_vm2, %v657_v45 }
 0x5c9   :  { %1409 = vmatprep.mubr.msk.bf16.mxu0 %vm1610_vm0, %v1609_v0 }
 0x68f   :  { %v1809_v46 = vpop.f32.mrb[12].mxu1 }
 0x690   :  { %v1381_v47 = vpop.f32.mrb[13].mxu1 }
 0x691   :  { %v538_v48 = vpop.f32.mrb[14].mxu1 }
 0x692   :  { %v1382_v49 = vpop.f32.mrb[15].mxu1 }
 0x693   :  { %v1811_v50 = vpop.f32.mrb[16].mxu0 }
 0x694   :  { %v1387_v51 = vpop.f32.mrb[17].mxu0 }
 0x695   :  { %v586_v52 = vpop.f32.mrb[18].mxu0 }
 0x696   :  { %v1388_v53 = vpop.f32.mrb[19].mxu0 }
 0x697   :  { %v650_v54 = vpop.f32.mrb[16].mxu1  ;;  %v1289_v53 = vpack.c.bf16 %v1809_v46, %v1809_v46 }
 0x698   :  { %v1393_v55 = vpop.f32.mrb[17].mxu1  ;;  %v706_v56 = vsel %vm148_vm2, %v650_v54, -inf }
 0x699   :  { %707 = vmax.xlane.f32.xlu0 %v706_v56  ;;  %v653_v57 = vpop.f32.mrb[18].mxu1 }
 0x69a   :  { %v1394_v58 = vpop.f32.mrb[19].mxu1 }
 0x69b   :  { %v700_v59 = vpop.f32.mrb[20].mxu0 }
 0x69c   :  { %v1399_v60 = vpop.f32.mrb[21].mxu0  ;;  %v709_v61 = vsel %vm148_vm2, %v700_v59, -inf }
 0x69d   :  { %710 = vmax.xlane.f32.xlu1 %v709_v61  ;;  %v703_v62 = vpop.f32.mrb[22].mxu0 }
 0x69e   :  { %v1400_v63 = vpop.f32.mrb[23].mxu0 }
 0x6ae   :  { %730 = vrot.lane.b32.xlu1 %v1729_v11, %s1617_s22 }
 0x6b2   :  { %845 = vrot.lane.b32.xlu1 %v1729_v11, %s1618_s23 }
 0x6b6   :  { %895 = vrot.lane.b32.xlu1 %v1732_v14, %s1618_s23 }
 0x6ba   :  { %893 = vrot.lane.b32.xlu1 %v1732_v14, %s1619_s24 }
 0x726   :  { %v708_v1 = vpop.xlane.xlu0 %707 }
 0x727   :  { %v712_v2 = vsub.f32 %v650_v54, %v708_v1  ;;  %v1290_v54 = vpack.c.bf16 %v1811_v50, %v1811_v50 }
 0x729   :  { %v714_v5 = vmul.f32 1.442695, %v712_v2 }
 0x72a   :  { %v711_v6 = vpop.xlane.xlu1 %710 }
 0x72b   :  { %1488 = vpow2.f32 %v714_v5  ;;  %v713_v7 = vsub.f32 %v700_v59, %v711_v6 }
 0x72d   :  { %v716_v8 = vmul.f32 1.442695, %v713_v7 }
 0x72e   :  { %v731_v9 = vpop.permute.xlu1 %730 }
 0x72f   :  { %1490 = vpow2.f32 %v716_v8  ;;  %v736_v10 = vsel %vm272_vm3, %v731_v9, 0 }
 0x730   :  { %1402 = vmatpush3.bf16.msra.mxu1 %v736_v10 }
 0x731   :  { %1413 = vmatprep.subr.bf16.mxu1 %v1609_v0 }
 0x732   :  { %v846_v22 = vpop.permute.xlu1 %845 }
 0x733   :  { %v851_v26 = vsel %vm148_vm2, %v846_v22, 0 }
 0x735   :  { %v1489_v12 = vpop.eup %1488 }
 0x736   :  { %v718_v13 = vsel %vm148_vm2, %v1489_v12, 0.0  ;;  %v896_v28 = vpop.permute.xlu1 %895 }
 0x737   :  { %719 = vadd.xlane.f32.xlu0 %v718_v13  ;;  %v901_v30 = vsel %vm148_vm2, %v896_v28, 0 }
 0x739   :  { %v1491_v15 = vpop.eup %1490 }
 0x73a   :  { %v721_v16 = vsel %vm148_vm2, %v1491_v15, 0.0  ;;  %v894_v32 = vpop.permute.xlu1 %893 }
 0x73b   :  { %722 = vadd.xlane.f32.xlu0 %v721_v16 }
 0x751   :  { %778 = vrot.lane.b32.xlu0 %v1732_v14, %s1617_s22 }
 0x755   :  { %843 = vrot.lane.b32.xlu0 %v1729_v11, %s1619_s24 }
 0x7c4   :  { %v720_v17 = vpop.xlane.xlu0 %719 }
 0x7c5   :  { %1492 = vrcp.f32 %v720_v17 }
 0x7c8   :  { %v723_v18 = vpop.xlane.xlu0 %722 }
 0x7c9   :  { %1494 = vrcp.f32 %v723_v18 }
 0x7cc   :  { %v779_v19 = vpop.permute.xlu0 %778 }
 0x7cd   :  { %v784_v20 = vsel %vm272_vm3, %v779_v19, 0 }
 0x7ce   :  { %1408 = vmatpush3.bf16.msra.mxu0 %v784_v20  ;;  %v1469_v20 = vld [vmem:[#allocation8] sm:$0xff]  }
 0x7cf   :  { %v1493_v21 = vpop.eup %1492  ;;  %1419 = vmatprep.subr.bf16.mxu0 %v1609_v0 }
 0x7d0   :  { %v726_v23 = vmul.f32 %v1493_v21, %v1489_v12  ;;  %v844_v31 = vpop.permute.xlu0 %843  ;;  %v1470_v21 = vld [vmem:[#allocation8 + $0x8] sm:$0xff]  }
 0x7d2   :  { %v728_v24 = vpack.c.bf16 %v726_v23, %v726_v23 }
 0x7d3   :  { %v1495_v25 = vpop.eup %1494 }
 0x7d4   :  { %v727_v27 = vmul.f32 %v1495_v25, %v1491_v15  ;;  %1404 = vmatmul.mubr.msk.bf16.vlgmr.msra.gmra.mrb[20].mxu1 %vm148_vm2, %v728_v24 }
 0x7d5   :  { %1414 = vmatpush3.bf16.xpose.msra.mxu1 %v851_v26  ;;  %1415 = vmatprep.mubr.msk.bf16.mxu1 %vm1610_vm0, %v1609_v0 }
 0x7d6   :  { %v729_v29 = vpack.c.bf16 %v727_v27, %v727_v27  ;;  %1425 = vmatprep.subr.bf16.mxu1 %v1609_v0 }
 0x7d8   :  { %1410 = vmatmul.mubr.msk.bf16.vlgmr.msra.gmra.mrb[24].mxu0 %vm148_vm2, %v729_v29 }
 0x7d9   :  { %1420 = vmatpush3.bf16.xpose.msra.mxu0 %v901_v30  ;;  %1421 = vmatprep.mubr.msk.bf16.mxu0 %vm1610_vm0, %v1609_v0 }
 0x7da   :  { %1431 = vmatprep.subr.bf16.mxu0 %v1609_v0 }
 0x7dc   :  { %1416 = vmatmul.mubr.msk.bf16.vlgmr.msra.gmra.mrb[24].mxu1 %vm148_vm2, %v844_v31 }
 0x7dd   :  { %1427 = vmatprep.mubr.msk.bf16.mxu1 %vm1610_vm0, %v1609_v0 }
 0x7e0   :  { %1422 = vmatmul.mubr.msk.bf16.vlgmr.msra.gmra.mrb[28].mxu0 %vm148_vm2, %v894_v32 }
 0x7e1   :  { %1433 = vmatprep.mubr.msk.bf16.mxu0 %vm1610_vm0, %v1609_v0 }
 0x8a7   :  { %v772_v33 = vpop.f32.mrb[20].mxu1 }
 0x8a8   :  { %v1405_v34 = vpop.f32.mrb[21].mxu1  ;;  %v1291_v7 = vpack.c.bf16 %v772_v33, %v772_v33 }
 0x8a9   :  { %v775_v35 = vpop.f32.mrb[22].mxu1 }
 0x8aa   :  { %v1406_v36 = vpop.f32.mrb[23].mxu1  ;;  %v1284_v35 = vld [vmem:[%s1910_s4] ss:$0 sm:$0xff] }
 0x8ab   :  { %v820_v37 = vpop.f32.mrb[24].mxu0 }
 0x8ac   :  { %v1411_v38 = vpop.f32.mrb[25].mxu0  ;;  %v1292_v55 = vpack.c.bf16 %v820_v37, %v820_v37 }
 0x8ad   :  { %v823_v39 = vpop.f32.mrb[26].mxu0 }
 0x8ae   :  { %v1412_v40 = vpop.f32.mrb[27].mxu0 }
 0x8af   :  { %v887_v41 = vpop.f32.mrb[24].mxu1 }
 0x8b0   :  { %v1417_v42 = vpop.f32.mrb[25].mxu1  ;;  %v943_v43 = vsel %vm148_vm2, %v887_v41, -inf }
 0x8b1   :  { %944 = vmax.xlane.f32.xlu0 %v943_v43  ;;  %v890_v44 = vpop.f32.mrb[26].mxu1 }
 0x8b2   :  { %v1418_v45 = vpop.f32.mrb[27].mxu1 }
 0x8b3   :  { %v937_v47 = vpop.f32.mrb[28].mxu0 }
 0x8b4   :  { %v1423_v48 = vpop.f32.mrb[29].mxu0  ;;  %v946_v49 = vsel %vm148_vm2, %v937_v47, -inf }
 0x8b5   :  { %947 = vmax.xlane.f32.xlu1 %v946_v49  ;;  %v940_v51 = vpop.f32.mrb[30].mxu0 }
 0x8b6   :  { %v1424_v52 = vpop.f32.mrb[31].mxu0 }
 0x8c6   :  { %967 = vrot.lane.b32.xlu1 %v1729_v11, %s1620_s26 }
 0x8ca   :  { %597 = vrot.lane.b32.xlu1 %v1289_v53, %s1607_s25 }
 0x8ce   :  { %599 = vrot.lane.b32.xlu1 %v1290_v54, %s1607_s25 }
 0x8d2   :  { %836 = vrot.lane.b32.xlu1 %v1292_v55, %s1621_s27 }
 0x93e   :  { %v945_v56 = vpop.xlane.xlu0 %944 }
 0x93f   :  { %v949_v57 = vsub.f32 %v887_v41, %v945_v56 }
 0x941   :  { %v951_v58 = vmul.f32 1.442695, %v949_v57 }
 0x942   :  { %v948_v59 = vpop.xlane.xlu1 %947 }
 0x943   :  { %1496 = vpow2.f32 %v951_v58  ;;  %v950_v60 = vsub.f32 %v937_v47, %v948_v59 }
 0x945   :  { %v953_v11 = vmul.f32 1.442695, %v950_v60 }
 0x946   :  { %v968_v61 = vpop.permute.xlu1 %967 }
 0x947   :  { %1498 = vpow2.f32 %v953_v11  ;;  %v973_v46 = vsel %vm272_vm3, %v968_v61, 0 }
 0x948   :  { %1426 = vmatpush3.bf16.msra.mxu1 %v973_v46 }
 0x949   :  { %1437 = vmatprep.subr.bf16.mxu1 %v1609_v0 }
 0x94a   :  { %v598_v50 = vpop.permute.xlu1 %597 }
 0x94b   :  { %604 = vst.msk [vmem:[#allocation2] sm:$0xf] %vm603_vm5, %v598_v50 }
 0x94d   :  { %v1497_v62 = vpop.eup %1496 }
 0x94e   :  { %v600_v63 = vpop.permute.xlu1 %599  ;;  %v955_v1 = vsel %vm148_vm2, %v1497_v62, 0.0 }
 0x94f   :  { %605 = vst.msk [vmem:[#allocation2 + $0x4] sm:$0xf] %vm603_vm5, %v600_v63  ;;  %956 = vadd.xlane.f32.xlu0 %v955_v1 }
 0x951   :  { %v1499_v2 = vpop.eup %1498 }
 0x952   :  { %v837_v5 = vpop.permute.xlu1 %836  ;;  %v958_v6 = vsel %vm148_vm2, %v1499_v2, 0.0 }
 0x953   :  { %842 = vst.msk [vmem:[#allocation2 + $0x4] sm:$0xf] %vm840_vm6, %v837_v5  ;;  %959 = vadd.xlane.f32.xlu0 %v958_v6 }
 0x969   :  { %1015 = vrot.lane.b32.xlu0 %v1732_v14, %s1620_s26 }
 0x96d   :  { %834 = vrot.lane.b32.xlu0 %v1291_v7, %s1621_s27 }
 0x9dc   :  { %v957_v8 = vpop.xlane.xlu0 %956 }
 0x9dd   :  { %1500 = vrcp.f32 %v957_v8 }
 0x9e0   :  { %v960_v9 = vpop.xlane.xlu0 %959 }
 0x9e1   :  { %1502 = vrcp.f32 %v960_v9 }
 0x9e4   :  { %v1016_v10 = vpop.permute.xlu0 %1015 }
 0x9e5   :  { %v1021_v12 = vsel %vm272_vm3, %v1016_v10, 0 }
 0x9e6   :  { %1432 = vmatpush3.bf16.msra.mxu0 %v1021_v12 }
 0x9e7   :  { %v1501_v13 = vpop.eup %1500 }
 0x9e8   :  { %v963_v15 = vmul.f32 %v1501_v13, %v1497_v62  ;;  %v835_v16 = vpop.permute.xlu0 %834 }
 0x9e9   :  { %841 = vst.msk [vmem:[#allocation2] sm:$0xf] %vm840_vm6, %v835_v16 }
 0x9ea   :  { %v965_v17 = vpack.c.bf16 %v963_v15, %v963_v15 }
 0x9eb   :  { %v1503_v18 = vpop.eup %1502 }
 0x9ec   :  { %v964_v19 = vmul.f32 %v1503_v18, %v1499_v2  ;;  %1428 = vmatmul.mubr.msk.bf16.vlgmr.msra.gmra.mrb[28].mxu1 %vm148_vm2, %v965_v17 }
 0x9ed   :  { %1441 = vmatprep.mubr.msk.bf16.mxu1 %vm1610_vm0, %v1609_v0  ;;  %1438 = vmatpush3.bf16.msra.mxu1 %v1469_v20 }
 0x9ee   :  { %v966_v14 = vpack.c.bf16 %v964_v19, %v964_v19  ;;  %1439 = vmatprep.subr.bf16.mxu1 %v1609_v0 }
 0x9f0   :  { %1434 = vmatmul.mubr.msk.bf16.vlgmr.msra.gmra.mrb[32].mxu0 %vm148_vm2, %v966_v14 }
 0x9f1   :  { %1440 = vmatpush3.bf16.msra.mxu1 %v1470_v21 }
 0xabf   :  { %v1009_v22 = vpop.f32.mrb[28].mxu1 }
 0xac0   :  { %v1293_v23 = vpack.c.bf16 %v1009_v22, %v1009_v22  ;;  %v1429_v24 = vpop.f32.mrb[29].mxu1 }
 0xac1   :  { %v1012_v25 = vpop.f32.mrb[30].mxu1 }
 0xac2   :  { %1071 = vrot.lane.b32.xlu0 %v1293_v23, %s1622_s28  ;;  %v1430_v26 = vpop.f32.mrb[31].mxu1 }
 0xac3   :  { %v1057_v27 = vpop.f32.mrb[32].mxu0 }
 0xac4   :  { %v1294_v28 = vpack.c.bf16 %v1057_v27, %v1057_v27  ;;  %v1435_v29 = vpop.f32.mrb[33].mxu0 }
 0xac5   :  { %v1060_v30 = vpop.f32.mrb[34].mxu0 }
 0xac6   :  { %1073 = vrot.lane.b32.xlu1 %v1294_v28, %s1622_s28  ;;  %v1436_v31 = vpop.f32.mrb[35].mxu0  ;;  %v1285_v28 = vld [vmem:[%s1911_s5] ss:$0 sm:$0xff]  ;;  %s1574_s5 = scalar_lea.vmem %s1240_s14, 256 }
 0xac7   :  { %v1286_v30 = vld [vmem:[%s1912_s6] ss:$0 sm:$0xff]  ;;  %p1575_p10 = scmp.ne.s32.totalorder %s1240_s14, %s1574_s5  ;;  %p1580_p12 = scmp.lt.s32.totalorder %s1574_s5, %s1574_s5 }
 0xac9   :  { %p1581_p13 = por %p1580_p12, %p1579_p11 }
 0xacb   :  { %p1582_p0 = pnand %p1581_p13, %p1575_p10 }
 0xb34   :  { %v1072_v32 = vpop.permute.xlu0 %1071 }
 0xb35   :  { %1078 = vst.msk [vmem:[#allocation2] sm:$0xf] %vm1077_vm7, %v1072_v32 }
 0xb38   :  { %v1074_v33 = vpop.permute.xlu1 %1073 }
 0xb39   :  { %1079 = vst.msk [vmem:[#allocation2 + $0x4] sm:$0xf] %vm1077_vm7, %v1074_v33 }
 0xb40   :  { %v1471_v0 = vld [vmem:[#allocation2] sm:$0xff]  }
 0xb41   :  { %1442 = vmatmul.mubr.msk.bf16.vlgmr.msra.gmra.mrb[32].mxu1 %vm95_vm1, %v1471_v0 }
 0xc14   :  { %v1140_v34 = vpop.f32.mrb[32].mxu1 }
 0xc15   :  { %v1147_v36 = vadd.f32 %v1140_v34, %v1715_v3  ;;  %v1443_v37 = vpop.f32.mrb[33].mxu1 }
 0xc16   :  { %v1143_v38 = vpop.f32.mrb[34].mxu1 }
 0xc17   :  { %v1156_v39 = vadd.f32 %v1284_v35, %v1147_v36  ;;  %v1148_v40 = vadd.f32 %v1143_v38, %v1717_v4  ;;  %v1444_v41 = vpop.f32.mrb[35].mxu1 }
 0xc19   :  { %v1873_v42 = vadd.f32 %v1284_v35, %v1148_v40  ;;  %v1158_v43 = vsel %vm95_vm1, %v1156_v39, 0.0  ;;  %v1176_v44 = vmul.f32 %v1156_v39, %v1156_v39 }
 0xc1a   :  { %1159 = vadd.xlane.f32.xlu0 %v1158_v43 }
 0xc1b   :  { %v1161_v45 = vsel %vm95_vm1, %v1873_v42, 0.0  ;;  %v1178_v47 = vsel %vm95_vm1, %v1176_v44, 0.0  ;;  %v1177_v3 = vmul.f32 %v1873_v42, %v1873_v42 }
 0xc1c   :  { %1162 = vadd.xlane.f32.xlu1 %v1161_v45 }
 0xc1d   :  { %v1181_v48 = vsel %vm95_vm1, %v1177_v3, 0.0 }
 0xc1e   :  { %1179 = vadd.xlane.f32.xlu0 %v1178_v47 }
 0xc22   :  { %1182 = vadd.xlane.f32.xlu0 %v1181_v48 }
 0xca7   :  { %v1160_v4 = vpop.xlane.xlu0 %1159 }
 0xca8   :  { %v1164_v49 = vrot.slane %v1160_v4, 4 }
 0xca9   :  { %v1163_v51 = vpop.xlane.xlu1 %1162 }
 0xcaa   :  { %v1165_v52 = vadd.f32 %v1164_v49, %v1160_v4  ;;  %v1170_v53 = vrot.slane %v1163_v51, 4 }
 0xcab   :  { %v1180_v54 = vpop.xlane.xlu0 %1179 }
 0xcac   :  { %v1166_v55 = vrot.slane %v1165_v52, 2  ;;  %v1171_v56 = vadd.f32 %v1170_v53, %v1163_v51  ;;  %v1184_v57 = vrot.slane %v1180_v54, 4 }
 0xcae   :  { %v1167_v58 = vadd.f32 %v1166_v55, %v1165_v52  ;;  %v1172_v59 = vrot.slane %v1171_v56, 2  ;;  %v1185_v60 = vadd.f32 %v1184_v57, %v1180_v54 }
 0xcaf   :  { %v1183_v11 = vpop.xlane.xlu0 %1182 }
 0xcb0   :  { %v1168_v61 = vrot.slane %v1167_v58, 1  ;;  %v1173_v46 = vadd.f32 %v1172_v59, %v1171_v56  ;;  %v1186_v50 = vrot.slane %v1185_v60, 2  ;;  %v1190_v62 = vrot.slane %v1183_v11, 4 }
 0xcb2   :  { %v1169_v63 = vadd.f32 %v1168_v61, %v1167_v58  ;;  %v1174_v1 = vrot.slane %v1173_v46, 1  ;;  %v1187_v2 = vadd.f32 %v1186_v50, %v1185_v60  ;;  %v1191_v5 = vadd.f32 %v1190_v62, %v1183_v11 }
 0xcb4   :  { %v1196_v6 = vmul.f32 0.00390625, %v1169_v63  ;;  %v1188_v7 = vrot.slane %v1187_v2, 1  ;;  %v1192_v8 = vrot.slane %v1191_v5, 2  ;;  %v1175_v9 = vadd.f32 %v1174_v1, %v1173_v46 }
 0xcb6   :  { %v1189_v10 = vadd.f32 %v1188_v7, %v1187_v2  ;;  %v1193_v12 = vadd.f32 %v1192_v8, %v1191_v5  ;;  %v1200_v13 = vmul.f32 %v1196_v6, %v1196_v6  ;;  %v1197_v16 = vmul.f32 0.00390625, %v1175_v9 }
 0xcb7   :  { %v1206_v26 = vsub.f32 %v1156_v39, %v1196_v6 }
 0xcb8   :  { %v1198_v15 = vmul.f32 0.00390625, %v1189_v10  ;;  %v1194_v17 = vrot.slane %v1193_v12, 1  ;;  %v1201_v20 = vmul.f32 %v1197_v16, %v1197_v16  ;;  %v1207_v32 = vsub.f32 %v1873_v42, %v1197_v16 }
 0xcba   :  { %v1202_v18 = vsub.f32 %v1198_v15, %v1200_v13  ;;  %v1195_v19 = vadd.f32 %v1194_v17, %v1193_v12 }
 0xcbc   :  { %v1204_v14 = vmax.f32 %v1202_v18, 0.0  ;;  %v1199_v21 = vmul.f32 0.00390625, %v1195_v19 }
 0xcbe   :  { %v1208_v22 = vadd.f32 1e-12, %v1204_v14  ;;  %v1203_v23 = vsub.f32 %v1199_v21, %v1201_v20 }
 0xcc0   :  { %1504 = vrsqrt.f32 %v1208_v22  ;;  %v1205_v24 = vmax.f32 %v1203_v23, 0.0 }
 0xcc2   :  { %v1209_v25 = vadd.f32 1e-12, %v1205_v24 }
 0xcc4   :  { %1506 = vrsqrt.f32 %v1209_v25 }
 0xcca   :  { %v1505_v27 = vpop.eup %1504 }
 0xccb   :  { %v1212_v29 = vmul.f32 %v1505_v27, %v1206_v26 }
 0xccd   :  { %v1222_v31 = vmul.f32 %v1285_v28, %v1212_v29 }
 0xcce   :  { %v1507_v33 = vpop.eup %1506 }
 0xccf   :  { %v1230_v0 = vadd.f32 %v1286_v30, %v1222_v31  ;;  %v1213_v34 = vmul.f32 %v1507_v33, %v1207_v32 }
 0xcd1   :  { %1232 = vst.msk [vmem:[#allocation9] sm:$0xff] %vm95_vm1, %v1230_v0  ;;  %v1223_v35 = vmul.f32 %v1285_v28, %v1213_v34 }
 0xcd3   :  { %v1231_v36 = vadd.f32 %v1286_v30, %v1223_v35 }
 0xcd5   :  { %1233 = vst.msk [vmem:[#allocation9 + $0x8] sm:$0xff] %vm95_vm1, %v1231_v36 }
 0xcd6   :  { %1585 = shalt.err (!%p1582_p0)
}
 0xcd7   :  { %s1586_s17 = scalar_lea.hbm %s1913_s7, 256 }
 0xcd8   :  { %p1587_p1 = scmp.ne.s32.totalorder %s1913_s7, %s1586_s17  ;;  %p1590_p2 = scmp.lt.u32.totalorder %s1586_s17, %s1913_s7 }
 0xcda   :  { %p1592_p3 = pnand %p1590_p2, %p1587_p1 }
 0xcdc   :  { %1595 = shalt.err (!%p1592_p3)
}
 0xcdd   :  { %1245 = dma.vmem_to_hbm [thread:$0]  %s1240_s14, 256, %s1913_s7, [#allocation5], %s1606_s1, %s1606_s1, %s1607_s25  }
 0xcde   :  { %1600 = dma.done.wait [#allocation5], 256  }
 0xcdf   :  { %1601 = vsyncadd [#allocation5], 4294967040 }
 0xce0   :  { %1249 = vsyncpa [#allocation4], 1 }
 0xce1   :  { %1250 = vsyncpa [#allocation7], 1 }
 0xce2   :  { %1251 = vsyncpa [#allocation5], 1 }

</bundles_post_ra>
